<compile_context>
chip_gen: v5e
topology: v5e:2x2
jax: 0.10.0
libtpu: 0.0.40
codegen_flags: <defaults>
</compile_context>

<pallas_src>
import functools
import math

import jax
import jax.numpy as jnp
from jax import lax
from jax.experimental import pallas as pl
from jax.experimental.pallas import tpu as pltpu


def _round_up(x, m):
    return ((x + m - 1) // m) * m


def _actor_critic_kernel(x_ref, a_ref, w1_ref, w23_ref, c_ref, out_ref, *, action_dim):
    A = action_dim

    cst = c_ref[...]                              # [D, 4] f32 biases + Gaussian constants
    b1 = cst[:, 0:1]                              # [D, 1] fused (actor|critic) layer-1 bias
    b2 = cst[:, 1:2]                              # [D, 1]
    b3 = cst[:, 2:3]                              # [D, 1]
    inv_var = cst[0:A, 3:4]                       # [A, 1] = 1 / action_var
    c0 = cst[A:A + 1, 3:4]                        # [1, 1] = logdet + A*log(2*pi)

    x = x_ref[...]                                # [TB, S] bf16 state block (natural layout)
    act = a_ref[...]                              # [A, TB] f32 action block (feature-major)

    # Layer 1 (actor & critic fused): contract over the feature axis -> [D, TB].
    h = jnp.tanh(
        lax.dot_general(w1_ref[...], x, (((1,), (1,)), ((), ())),
                        preferred_element_type=jnp.float32) + b1)
    # Layers 2/3: block-diagonal fused [D, D] matmuls, bf16 operands, f32 accum.
    h = jnp.tanh(
        jnp.dot(w23_ref[0], h.astype(jnp.bfloat16),
                preferred_element_type=jnp.float32) + b2)
    o = jnp.dot(w23_ref[1], h.astype(jnp.bfloat16),
                preferred_element_type=jnp.float32) + b3          # [D, TB]

    action_mean = jnp.tanh(o[0:A, :])             # [A, TB]  actor head (tanh-squashed)
    value = o[A:A + 1, :]                         # [1, TB]  critic head (linear)

    # diag-Gaussian log prob: -0.5 * (sum(diff^2 / var) + logdet + A*log(2*pi))
    diff = act - action_mean                      # [A, TB] (action kept f32 -> exact)
    maha = jnp.sum(diff * diff * inv_var, axis=0, keepdims=True)  # [1, TB]
    logp = -0.5 * (maha + c0)                     # [1, TB]

    # Single lane-dense store of the whole [2, TB] output slab.
    out_ref[...] = jnp.concatenate([logp, value], axis=0)


def actor_critic_evaluate(state, action, params, action_var, *, batch_tile=2048):
    """Returns (action_logprobs [B], state_value [B], dist_entropy [B])."""
    B, S = state.shape
    A = action.shape[-1]
    (aw1, ab1, aw2, ab2, aw3, ab3,
     cw1, cb1, cw2, cb2, cw3, cb3) = params
    H = aw1.shape[0]                              # n_var (weights stored [out, in])

    # Fused actor+critic feature width; NOT padded to 128 (kernel is HBM-bound).
    D = _round_up(max(2 * H, A + 1), 8)

    # ---- batch tile / grid selection ----------------------------------------
    batch_tile = max(128, _round_up(batch_tile, 128))
    bp128 = _round_up(B, 128)
    tb = min(batch_tile, bp128)
    if bp128 >= 256:
        # Ensure the "parallel" grid axis has >= 2 steps so v7x megacore can
        # split the batch across both TensorCores.
        tb = min(tb, max(128, (bp128 // 2) // 128 * 128))
    Bp = _round_up(B, tb)

    # ---- pack parameters (3 small resident DMAs) -----------------------------
    w1 = jnp.zeros((D, S), jnp.float32)
    w1 = w1.at[0:H, :].set(aw1)                   # layer 1: actor rows
    w1 = w1.at[H:2 * H, :].set(cw1)               #          critic rows
    w23 = jnp.zeros((2, D, D), jnp.float32)
    w23 = w23.at[0, 0:H, 0:H].set(aw2)            # layer 2: block-diagonal
    w23 = w23.at[0, H:2 * H, H:2 * H].set(cw2)
    w23 = w23.at[1, 0:A, 0:H].set(aw3)            # layer 3: actor head + critic head
    w23 = w23.at[1, A, H:2 * H].set(cw3[0])
    w1 = w1.astype(jnp.bfloat16)                  # bf16 matmul operands, f32 accumulation
    w23 = w23.astype(jnp.bfloat16)

    log2pi = math.log(2.0 * math.pi)
    logdet = jnp.sum(jnp.log(action_var))
    c0 = logdet + A * log2pi

    C = jnp.zeros((D, 4), jnp.float32)
    C = C.at[0:H, 0].set(ab1)
    C = C.at[H:2 * H, 0].set(cb1)
    C = C.at[0:H, 1].set(ab2)
    C = C.at[H:2 * H, 1].set(cb2)
    C = C.at[0:A, 2].set(ab3)
    C = C.at[A, 2].set(cb3[0])
    C = C.at[0:A, 3].set(1.0 / action_var)
    C = C.at[A, 3].set(c0)

    # ---- batch inputs: natural-layout state (bf16), tiny transposed action ---
    if Bp == B:
        x = state.astype(jnp.bfloat16)                              # [B, S], no copy/pad
        at = action.T.astype(jnp.float32)                           # [A, B]
    else:
        x = jnp.zeros((Bp, S), jnp.bfloat16).at[0:B, :].set(state.astype(jnp.bfloat16))
        at = jnp.zeros((A, Bp), jnp.float32).at[:, 0:B].set(action.T.astype(jnp.float32))

    kernel = functools.partial(_actor_critic_kernel, action_dim=A)
    out = pl.pallas_call(
        kernel,
        out_shape=jax.ShapeDtypeStruct((2, Bp), jnp.float32),
        grid=(Bp // tb,),
        in_specs=[
            pl.BlockSpec((tb, S), lambda i: (i, 0)),       # state, batch-blocked, natural layout
            pl.BlockSpec((A, tb), lambda i: (0, i)),       # action^T, batch on lanes
            pl.BlockSpec((D, S), lambda i: (0, 0)),        # layer-1 fused weights (resident)
            pl.BlockSpec((2, D, D), lambda i: (0, 0, 0)),  # layer-2/3 fused weights (resident)
            pl.BlockSpec((D, 4), lambda i: (0, 0)),        # biases + Gaussian constants
        ],
        out_specs=pl.BlockSpec((2, tb), lambda i: (0, i)),
        compiler_params=pltpu.CompilerParams(
            dimension_semantics=("parallel",)),            # megacore split on v7x
    )(x, at, w1, w23, C)

    logp = out[0, :B]
    value = out[1, :B]
    entropy = jnp.full(
        (B,), 0.5 * (A * (1.0 + log2pi)) + 0.5 * logdet, jnp.float32)
    return logp, value, entropy


def init_params(key, state_dim, action_dim, n_var):
    """Deterministic PyTorch nn.Linear-style init; weights stored [out, in]."""
    def linear(key, fan_in, fan_out):
        k1, k2 = jax.random.split(key)
        bound = 1.0 / math.sqrt(fan_in)
        w = jax.random.uniform(k1, (fan_out, fan_in), jnp.float32, -bound, bound)
        b = jax.random.uniform(k2, (fan_out,), jnp.float32, -bound, bound)
        return w, b

    keys = jax.random.split(key, 6)
    aw1, ab1 = linear(keys[0], state_dim, n_var)
    aw2, ab2 = linear(keys[1], n_var, n_var)
    aw3, ab3 = linear(keys[2], n_var, action_dim)
    cw1, cb1 = linear(keys[3], state_dim, n_var)
    cw2, cb2 = linear(keys[4], n_var, n_var)
    cw3, cb3 = linear(keys[5], n_var, 1)
    return (aw1, ab1, aw2, ab2, aw3, ab3,
            cw1, cb1, cw2, cb2, cw3, cb3)


def _gauss_logp_ent(action, mean, action_var):
    d = action.shape[-1]
    var = action_var[None, :]
    diff = action - mean
    logp = -0.5 * (jnp.sum(diff * diff / var, -1)
                   + jnp.sum(jnp.log(var), -1)
                   + d * math.log(2.0 * math.pi))
    ent = jnp.full((action.shape[0],),
                   0.5 * (d * (1.0 + math.log(2.0 * math.pi))
                          + jnp.sum(jnp.log(action_var))))
    return logp, ent


def reference_evaluate(state, action, params, action_var):
    """Pure-JAX f32 reference mirroring the PyTorch module."""
    (aw1, ab1, aw2, ab2, aw3, ab3,
     cw1, cb1, cw2, cb2, cw3, cb3) = params
    h = jnp.tanh(state @ aw1.T + ab1)
    h = jnp.tanh(h @ aw2.T + ab2)
    mean = jnp.tanh(h @ aw3.T + ab3)
    c = jnp.tanh(state @ cw1.T + cb1)
    c = jnp.tanh(c @ cw2.T + cb2)
    value = (c @ cw3.T + cb3)[:, 0]
    logp, ent = _gauss_logp_ent(action, mean, action_var)
    return logp, value, ent


def reference_evaluate_bf16(state, action, params, action_var):
    """Reference that mirrors the kernel's bf16 operand quantization exactly."""
    bf = lambda t: t.astype(jnp.bfloat16).astype(jnp.float32)
    (aw1, ab1, aw2, ab2, aw3, ab3,
     cw1, cb1, cw2, cb2, cw3, cb3) = params
    s = bf(state)
    h = jnp.tanh(s @ bf(aw1).T + ab1)
    h = jnp.tanh(bf(h) @ bf(aw2).T + ab2)
    mean = jnp.tanh(bf(h) @ bf(aw3).T + ab3)
    c = jnp.tanh(s @ bf(cw1).T + cb1)
    c = jnp.tanh(bf(c) @ bf(cw2).T + cb2)
    value = (bf(c) @ bf(cw3).T + cb3)[:, 0]
    logp, ent = _gauss_logp_ent(action, mean, action_var)
    return logp, value, ent


if __name__ == "__main__":
    # Small shapes consistent with the module's constructor.
    B, STATE_DIM, ACTION_DIM, N_VAR = 8, 16, 4, 32
    ACTION_STD = 0.5

    key = jax.random.PRNGKey(0)
    k_params, k_state, k_action = jax.random.split(key, 3)

    params = init_params(k_params, STATE_DIM, ACTION_DIM, N_VAR)
    action_var = jnp.full((ACTION_DIM,), ACTION_STD * ACTION_STD, jnp.float32)

    state = jax.random.normal(k_state, (B, STATE_DIM), jnp.float32)
    action = jax.random.normal(k_action, (B, ACTION_DIM), jnp.float32)

    logp, value, ent = actor_critic_evaluate(state, action, params, action_var)
    jax.block_until_ready((logp, value, ent))

    # Tight check against a reference that applies the same bf16 operand quantization.
    logp_q, value_q, ent_q = reference_evaluate_bf16(state, action, params, action_var)
    assert jnp.allclose(logp, logp_q, atol=2e-3), "logprob mismatch (bf16 ref)"
    assert jnp.allclose(value, value_q, atol=2e-3), "value mismatch (bf16 ref)"
    assert jnp.allclose(ent, ent_q, atol=1e-5), "entropy mismatch (bf16 ref)"

    # Loose sanity check against the full-f32 PyTorch semantics (bf16 operands
    # introduce ~1e-2-level deltas in logprob, per review).
    logp_r, value_r, ent_r = reference_evaluate(state, action, params, action_var)
    assert jnp.allclose(logp, logp_r, atol=0.3, rtol=0.05), "logprob mismatch (f32 ref)"
    assert jnp.allclose(value, value_r, atol=0.05), "value mismatch (f32 ref)"
    assert jnp.allclose(ent, ent_r, atol=1e-5), "entropy mismatch (f32 ref)"

    print("KERNEL_OK")
</pallas_src>

<mosaic_0001>
module attributes {stable_mosaic.version = 11 : i64} {
  func.func @_actor_critic_kernel(%arg0: i32, %arg1: memref<128x16xbf16, #tpu.memory_space<vmem>>, %arg2: memref<4x128xf32, #tpu.memory_space<vmem>>, %arg3: memref<64x16xbf16, #tpu.memory_space<vmem>>, %arg4: memref<2x64x64xbf16, #tpu.memory_space<vmem>>, %arg5: memref<64x4xf32, #tpu.memory_space<vmem>>, %arg6: memref<2x128xf32, #tpu.memory_space<vmem>>) attributes {dimension_semantics = [#tpu.dimension_semantics<parallel>], iteration_bounds = array<i64: 1>, scalar_prefetch = 0 : i64, scratch_operands = 0 : i64, tpu.core_type = #tpu.core_type<tc>, window_params = [{transform_indices = @transform_0, window_bounds = array<i64: 128, 16>}, {transform_indices = @transform_1, window_bounds = array<i64: 4, 128>}, {pipeline_mode = #tpu.pipeline_mode<synchronous>, transform_indices = @transform_2, window_bounds = array<i64: 64, 16>}, {pipeline_mode = #tpu.pipeline_mode<synchronous>, transform_indices = @transform_3, window_bounds = array<i64: 2, 64, 64>}, {pipeline_mode = #tpu.pipeline_mode<synchronous>, transform_indices = @transform_4, window_bounds = array<i64: 64, 4>}, {transform_indices = @transform_5, window_bounds = array<i64: 2, 128>}]} {
    %c0 = arith.constant 0 : index
    %c0_0 = arith.constant 0 : index
    %0 = vector.load %arg5[%c0, %c0_0] : memref<64x4xf32, #tpu.memory_space<vmem>>, vector<64x4xf32>
    %1 = vector.extract_strided_slice %0 {offsets = [0, 0], sizes = [64, 1], strides = [1, 1]} : vector<64x4xf32> to vector<64x1xf32>
    %2 = vector.extract_strided_slice %0 {offsets = [0, 1], sizes = [64, 1], strides = [1, 1]} : vector<64x4xf32> to vector<64x1xf32>
    %3 = vector.extract_strided_slice %0 {offsets = [0, 2], sizes = [64, 1], strides = [1, 1]} : vector<64x4xf32> to vector<64x1xf32>
    %4 = vector.extract_strided_slice %0 {offsets = [0, 3], sizes = [4, 1], strides = [1, 1]} : vector<64x4xf32> to vector<4x1xf32>
    %5 = vector.extract_strided_slice %0 {offsets = [4, 3], sizes = [1, 1], strides = [1, 1]} : vector<64x4xf32> to vector<1x1xf32>
    %c0_1 = arith.constant 0 : index
    %c0_2 = arith.constant 0 : index
    %6 = vector.load %arg1[%c0_1, %c0_2] : memref<128x16xbf16, #tpu.memory_space<vmem>>, vector<128x16xbf16>
    %c0_3 = arith.constant 0 : index
    %c0_4 = arith.constant 0 : index
    %7 = vector.load %arg2[%c0_3, %c0_4] : memref<4x128xf32, #tpu.memory_space<vmem>>, vector<4x128xf32>
    %c0_5 = arith.constant 0 : index
    %c0_6 = arith.constant 0 : index
    %8 = vector.load %arg3[%c0_5, %c0_6] : memref<64x16xbf16, #tpu.memory_space<vmem>>, vector<64x16xbf16>
    %cst = arith.constant dense<0.000000e+00> : vector<64x128xf32>
    %9 = tpu.matmul %8, %6, %cst {dimension_numbers = #tpu.dot_dimension_numbers<[1], [1], [0], [0], [0, 0, 1, 0], [], []>} : vector<64x16xbf16>, vector<128x16xbf16>, vector<64x128xf32> -> vector<64x128xf32>
    %10 = vector.broadcast %1 : vector<64x1xf32> to vector<64x128xf32>
    %11 = arith.addf %9, %10 : vector<64x128xf32>
    %12 = math.tanh %11 : vector<64x128xf32>
    %c0_7 = arith.constant 0 : index
    %c0_8 = arith.constant 0 : index
    %c0_9 = arith.constant 0 : index
    %13 = vector.load %arg4[%c0_7, %c0_8, %c0_9] : memref<2x64x64xbf16, #tpu.memory_space<vmem>>, vector<1x64x64xbf16>
    %14 = vector.shape_cast %13 : vector<1x64x64xbf16> to vector<64x64xbf16>
    %15 = arith.truncf %12 : vector<64x128xf32> to vector<64x128xbf16>
    %cst_10 = arith.constant dense<0.000000e+00> : vector<64x128xf32>
    %16 = tpu.matmul %14, %15, %cst_10 {dimension_numbers = #tpu.dot_dimension_numbers<[1], [0], [0], [1], [0, 0, 1, 1], [], []>} : vector<64x64xbf16>, vector<64x128xbf16>, vector<64x128xf32> -> vector<64x128xf32>
    %17 = vector.broadcast %2 : vector<64x1xf32> to vector<64x128xf32>
    %18 = arith.addf %16, %17 : vector<64x128xf32>
    %19 = math.tanh %18 : vector<64x128xf32>
    %c1 = arith.constant 1 : index
    %c0_11 = arith.constant 0 : index
    %c0_12 = arith.constant 0 : index
    %20 = vector.load %arg4[%c1, %c0_11, %c0_12] : memref<2x64x64xbf16, #tpu.memory_space<vmem>>, vector<1x64x64xbf16>
    %21 = vector.shape_cast %20 : vector<1x64x64xbf16> to vector<64x64xbf16>
    %22 = arith.truncf %19 : vector<64x128xf32> to vector<64x128xbf16>
    %cst_13 = arith.constant dense<0.000000e+00> : vector<64x128xf32>
    %23 = tpu.matmul %21, %22, %cst_13 {dimension_numbers = #tpu.dot_dimension_numbers<[1], [0], [0], [1], [0, 0, 1, 1], [], []>} : vector<64x64xbf16>, vector<64x128xbf16>, vector<64x128xf32> -> vector<64x128xf32>
    %24 = vector.broadcast %3 : vector<64x1xf32> to vector<64x128xf32>
    %25 = arith.addf %23, %24 : vector<64x128xf32>
    %26 = vector.extract_strided_slice %25 {offsets = [0, 0], sizes = [4, 128], strides = [1, 1]} : vector<64x128xf32> to vector<4x128xf32>
    %27 = math.tanh %26 : vector<4x128xf32>
    %28 = vector.extract_strided_slice %25 {offsets = [4, 0], sizes = [1, 128], strides = [1, 1]} : vector<64x128xf32> to vector<1x128xf32>
    %29 = arith.subf %7, %27 : vector<4x128xf32>
    %30 = arith.mulf %29, %29 : vector<4x128xf32>
    %31 = vector.broadcast %4 : vector<4x1xf32> to vector<4x128xf32>
    %32 = arith.mulf %30, %31 : vector<4x128xf32>
    %cst_14 = arith.constant dense<0.000000e+00> : vector<128xf32>
    %33 = vector.multi_reduction <add>, %32, %cst_14 [0] : vector<4x128xf32> to vector<128xf32>
    %34 = vector.shape_cast %33 : vector<128xf32> to vector<1x128xf32>
    %35 = vector.broadcast %5 : vector<1x1xf32> to vector<1x128xf32>
    %36 = arith.addf %34, %35 : vector<1x128xf32>
    %cst_15 = arith.constant -5.000000e-01 : f32
    %37 = vector.broadcast %cst_15 : f32 to vector<1x128xf32>
    %38 = arith.mulf %37, %36 : vector<1x128xf32>
    %39 = tpu.concatenate %38, %28 in 0 : vector<1x128xf32>, vector<1x128xf32> -> vector<2x128xf32>
    %c0_16 = arith.constant 0 : index
    %c0_17 = arith.constant 0 : index
    %40 = vector.load %arg6[%c0_16, %c0_17] : memref<2x128xf32, #tpu.memory_space<vmem>>, vector<2x128xf32>
    tpu.vector_store %arg6[%c0_16, %c0_17], %39 {strides = array<i32>} : memref<2x128xf32, #tpu.memory_space<vmem>>, vector<2x128xf32>,
    return
  }
  func.func @transform_0(%arg0: i32) -> (i32, i32) {
    %c0_i32 = arith.constant 0 : i32
    %c0_i32_0 = arith.constant 0 : i32
    return %arg0, %c0_i32 : i32, i32
  }
  func.func @transform_1(%arg0: i32) -> (i32, i32) {
    %c0_i32 = arith.constant 0 : i32
    %c0_i32_0 = arith.constant 0 : i32
    return %c0_i32, %arg0 : i32, i32
  }
  func.func @transform_2(%arg0: i32) -> (i32, i32) {
    %c0_i32 = arith.constant 0 : i32
    %c0_i32_0 = arith.constant 0 : i32
    %c0_i32_1 = arith.constant 0 : i32
    return %c0_i32, %c0_i32_0 : i32, i32
  }
  func.func @transform_3(%arg0: i32) -> (i32, i32, i32) {
    %c0_i32 = arith.constant 0 : i32
    %c0_i32_0 = arith.constant 0 : i32
    %c0_i32_1 = arith.constant 0 : i32
    %c0_i32_2 = arith.constant 0 : i32
    return %c0_i32, %c0_i32_0, %c0_i32_1 : i32, i32, i32
  }
  func.func @transform_4(%arg0: i32) -> (i32, i32) {
    %c0_i32 = arith.constant 0 : i32
    %c0_i32_0 = arith.constant 0 : i32
    %c0_i32_1 = arith.constant 0 : i32
    return %c0_i32, %c0_i32_0 : i32, i32
  }
  func.func @transform_5(%arg0: i32) -> (i32, i32) {
    %c0_i32 = arith.constant 0 : i32
    %c0_i32_0 = arith.constant 0 : i32
    return %c0_i32, %arg0 : i32, i32
  }
}

</mosaic_0001>

<bundles_post_ra>
// kernel: tpu_custom_call.1
= control target key start
LH: loop header
LB: loop body
LE: loop exit
PB: predicated region body
PF: predicated region fallthrough
CT: control target
= control target key end

     0   :  { %vm155_vm0 = vcmask 130048   ;;  %s838_s0 = inlined_call_operand.vmem [shape: bf16[128,16], index: 0, kind: input, shape index: {}]   ;;  %s839_s1 = inlined_call_operand.vmem [shape: f32[4,128], index: 1, kind: input, shape index: {}]   ;;  %s840_s2 = inlined_call_operand.vmem [shape: bf16[64,16], index: 2, kind: input, shape index: {}]   ;;  %s841_s3 = inlined_call_operand.vmem [shape: bf16[2,64,64], index: 3, kind: input, shape index: {}]   ;;  %s842_s4 = inlined_call_operand.vmem [shape: f32[64,4], index: 4, kind: input, shape index: {}]   ;;  %s843_s5 = inlined_call_operand.hbm [shape: f32[2,128], index: 5, kind: output, shape index: {}]  }
   0x1   :  { %v585_v0 = vld [vmem:[%s838_s0 + $0x38] sm:$0xff] }
   0x2   :  { %10 = vsyncpa [#allocation3], 0  ;;  %v190_v1 = vsel %vm155_vm0, %v585_v0, 0  ;;  %v584_v2 = vld [vmem:[%s838_s0 + $0x30] sm:$0xff]  ;;  %v583_v4 = vld [vmem:[%s838_s0 + $0x28] sm:$0xff]  ;;  %v679_v13 = vmov 0  }
   0x3   :  { %598 = vmatpush.bf16.xpose.msra.mxu3 %v190_v1  ;;  %192 = vmatpush.bf16.xpose.msra.mxu0 %v190_v1  ;;  %v187_v3 = vsel %vm155_vm0, %v584_v2, 0  ;;  %v184_v5 = vsel %vm155_vm0, %v583_v4, 0  ;;  %v582_v6 = vld [vmem:[%s838_s0 + $0x20] sm:$0xff]  ;;  %v581_v8 = vld [vmem:[%s838_s0 + $0x18] sm:$0xff]  ;;  %v28_v10 = vld [vmem:[%s842_s4 + $0x30] sm:$0xff]  ;;  %v680_v40 = vmov 1  }
   0x4   :  { %v181_v7 = vsel %vm155_vm0, %v582_v6, 0  ;;  %v178_v9 = vsel %vm155_vm0, %v581_v8, 0  ;;  %v26_v11 = vld [vmem:[%s842_s4 + $0x20] sm:$0xff]  ;;  %v580_v12 = vld [vmem:[%s838_s0 + $0x10] sm:$0xff]  ;;  %612 = vset.pattern.permute.xlu1 %v679_v13  ;;  %611 = vset.pattern.permute.xlu0 %v679_v13  ;;  %v579_v15 = vld [vmem:[%s838_s0 + $0x8] sm:$0xff]  ;;  %vm293_vm1 = vcmask 523264  }
   0x5   :  { %87 = vperm.xlu0 %611, %v28_v10   ;;  %77 = vperm.xlu1 %612, %v26_v11   ;;  %v175_v14 = vsel %vm155_vm0, %v580_v12, 0  ;;  %v172_v16 = vsel %vm155_vm0, %v579_v15, 0  ;;  %v29_v17 = vld [vmem:[%s842_s4 + $0x38] sm:$0xff]  ;;  %v27_v18 = vld [vmem:[%s842_s4 + $0x28] sm:$0xff]  ;;  %v24_v19 = vld [vmem:[%s842_s4 + $0x10] sm:$0xff]  ;;  %vm443_vm2 = vcmask 1043456  }
   0x6   :  { %613 = vset.pattern.permute.xlu2 %v679_v13  ;;  %v578_v20 = vld [vmem:[%s838_s0] sm:$0xff]  ;;  %v764_v22 = vld [vmem:[%s842_s4 + $0x8] sm:$0xff]  ;;  %v774_v24 = vld [vmem:[%s842_s4 + $0x18] sm:$0xff]  ;;  %s469_s0 = sshll.u32 %s843_s5, 4  ;;  %vm459_vm3 = vcmask 1040384   ;;  %s470_s0 = int_to_ptr.hbm [resolvable:$true] %s469_s0 }
   0x7   :  { %67 = vperm.xlu2 %613, %v24_v19   ;;  %v169_v21 = vsel %vm155_vm0, %v578_v20, 0  ;;  %v769_v23 = vld [vmem:[%s842_s4] sm:$0xff]  ;;  %v588_v25 = vld [vmem:[%s840_s2 + $0x10] sm:$0xff]  ;;  %v589_v27 = vld [vmem:[%s840_s2 + $0x18] sm:$0xff] }
   0x8   :  { %v586_v26 = vld [vmem:[%s840_s2] sm:$0xff]  ;;  %v587_v28 = vld [vmem:[%s840_s2 + $0x8] sm:$0xff]  ;;  %v592_v4 = vld [vmem:[%s841_s3 + $0x10] sm:$0xff] }
   0x9   :  { %v590_v2 = vld [vmem:[%s841_s3] sm:$0xff] }
   0xb   :  { %599 = vmatpush.bf16.xpose.msra.mxu3 %v187_v3  ;;  %193 = vmatpush.bf16.xpose.msra.mxu0 %v187_v3  ;;  %v591_v3 = vld [vmem:[%s841_s3 + $0x8] sm:$0xff] }
   0xd   :  { %92 = vperm.xlu0 %611, %v29_v17   ;;  %82 = vperm.xlu1 %612, %v27_v18  }
   0xf   :  { %72 = vperm.xlu2 %613, %v774_v24  }
  0x13   :  { %600 = vmatpush.bf16.xpose.msra.mxu3 %v184_v5  ;;  %194 = vmatpush.bf16.xpose.msra.mxu0 %v184_v5  ;;  %v593_v5 = vld [vmem:[%s841_s3 + $0x18] sm:$0xff] }
  0x15   :  { %62 = vperm.xlu1 %612, %v764_v22   ;;  %57 = vperm.xlu0 %611, %v769_v23  }
  0x17   :  { %614 = vset.pattern.permute.xlu2 %v680_v40 }
  0x18   :  { %266 = vperm.xlu2 %614, %v28_v10  }
  0x1b   :  { %601 = vmatpush.bf16.xpose.msra.mxu3 %v181_v7  ;;  %195 = vmatpush.bf16.xpose.msra.mxu0 %v181_v7 }
  0x1d   :  { %616 = vset.pattern.permute.xlu1 %v680_v40  ;;  %615 = vset.pattern.permute.xlu0 %v680_v40 }
  0x1e   :  { %258 = vperm.xlu1 %616, %v26_v11   ;;  %270 = vperm.xlu0 %615, %v29_v17  }
  0x20   :  { %262 = vperm.xlu2 %614, %v27_v18  }
  0x23   :  { %602 = vmatpush.bf16.xpose.msra.mxu3 %v178_v9  ;;  %196 = vmatpush.bf16.xpose.msra.mxu0 %v178_v9 }
  0x26   :  { %250 = vperm.xlu1 %616, %v24_v19   ;;  %242 = vperm.xlu0 %615, %v769_v23  }
  0x28   :  { %254 = vperm.xlu2 %614, %v774_v24  }
  0x2b   :  { %603 = vmatpush.bf16.xpose.msra.mxu3 %v175_v14  ;;  %197 = vmatpush.bf16.xpose.msra.mxu0 %v175_v14 }
  0x2e   :  { %246 = vperm.xlu1 %616, %v764_v22  }
  0x33   :  { %604 = vmatpush.bf16.xpose.msra.mxu3 %v172_v16  ;;  %198 = vmatpush.bf16.xpose.msra.mxu0 %v172_v16 }
  0x3b   :  { %605 = vmatpush.bf16.xpose.msra.mxu3 %v169_v21  ;;  %199 = vmatpush.bf16.xpose.msra.mxu0 %v169_v21 }
  0x42   :  { %528 = vmatmul.msk.bf16.vlgmr.msra.gmra.mxu3 %vm155_vm0, %v588_v25  ;;  %526 = vmatmul.msk.bf16.vlgmr.msra.gmra.mxu0 %vm155_vm0, %v586_v26 }
  0x52   :  { %529 = vmatmul.msk.bf16.gmra.mxu3 %vm155_vm0, %v589_v27  ;;  %527 = vmatmul.msk.bf16.gmra.mxu0 %vm155_vm0, %v587_v28 }
  0x61   :  { %v68_v35 = vpop.permute.xlu2 %67 }
  0x69   :  { %v73_v46 = vpop.permute.xlu2 %72 }
  0x72   :  { %v267_v11 = vpop.permute.xlu2 %266 }
  0x77   :  { %v88_v33 = vpop.permute.xlu0 %87  ;;  %v78_v34 = vpop.permute.xlu1 %77 }
  0x7a   :  { %v263_v14 = vpop.permute.xlu2 %262 }
  0x7f   :  { %v93_v38 = vpop.permute.xlu0 %92  ;;  %v83_v39 = vpop.permute.xlu1 %82 }
  0x82   :  { %v255_v22 = vpop.permute.xlu2 %254 }
  0x87   :  { %v58_v49 = vpop.permute.xlu0 %57  ;;  %v63_v51 = vpop.permute.xlu1 %62 }
  0x90   :  { %v259_v13 = vpop.permute.xlu1 %258  ;;  %v271_v17 = vpop.permute.xlu0 %270 }
  0x98   :  { %v251_v16 = vpop.permute.xlu1 %250 }
  0xa0   :  { %v247_v26 = vpop.permute.xlu1 %246 }
  0xbf   :  { %v201_v29 = vpop.f32.mrf.mxu0 }
  0xc0   :  { %v202_v53 = vadd.f32 %v201_v29, %v58_v49  ;;  %v243_v29 = vpop.permute.xlu0 %242 }
  0xc5   :  { %v211_v30 = vpop.f32.mrf.mxu3 }
  0xc6   :  { %v212_v47 = vadd.f32 %v211_v30, %v78_v34 }
  0xc7   :  { %v203_v31 = vpop.f32.mrf.mxu0 }
  0xc8   :  { %v204_v55 = vadd.f32 %v203_v31, %v63_v51  ;;  %v46_v51 = vld [vmem:[%s839_s1] sm:$0xf] }
  0xcd   :  { %v213_v32 = vpop.f32.mrf.mxu3 }
  0xce   :  { %v214_v43 = vadd.f32 %v213_v32, %v83_v39 }
  0xcf   :  { %v206_v36 = vpop.f32.mrf.mxu0 }
  0xd0   :  { %v207_v48 = vadd.f32 %v206_v36, %v68_v35  ;;  %v681_v35 = vmov 3  }
  0xd1   :  { %618 = vset.pattern.permute.xlu0 %v681_v35 }
  0xd2   :  { %439 = vperm.xlu0 %618, %v769_v23  }
  0xd5   :  { %v216_v37 = vpop.f32.mrf.mxu3 }
  0xd6   :  { %v217_v41 = vadd.f32 %v216_v37, %v88_v33 }
  0xd7   :  { %v208_v45 = vpop.f32.mrf.mxu0 }
  0xd8   :  { %619 = vtanh.f32 %v217_v41  ;;  %v209_v50 = vadd.f32 %v208_v45, %v73_v46  ;;  %v682_v45 = vmov 2   ;;  %v595_v46 = vld [vmem:[%s841_s3 + $0x28] sm:$0xff] }
  0xd9   :  { %617 = vset.pattern.permute.xlu2 %v682_v45 }
  0xda   :  { %357 = vperm.xlu2 %617, %v769_v23  }
  0xdd   :  { %v218_v42 = vpop.f32.mrf.mxu3 }
  0xde   :  { %v219_v44 = vadd.f32 %v218_v42, %v93_v38  ;;  %v620_v52 = vpop.eup %619 }
  0xe0   :  { %621 = vtanh.f32 %v219_v44  ;;  %v594_v44 = vld [vmem:[%s841_s3 + $0x20] sm:$0xff] }
  0xe1   :  { %623 = vtanh.f32 %v214_v43 }
  0xe2   :  { %625 = vtanh.f32 %v212_v47  ;;  %v596_v47 = vld [vmem:[%s841_s3 + $0x30] sm:$0xff] }
  0xe3   :  { %627 = vtanh.f32 %v207_v48  ;;  %v597_v48 = vld [vmem:[%s841_s3 + $0x38] sm:$0xff]  ;;  %s683_s3 = smov [#allocation2]  }
  0xe4   :  { %629 = vtanh.f32 %v209_v50  ;;  %s467_s1 = sshll.u32 %s683_s3, 4  ;;  %s468_s1 = int_to_ptr.vmem [resolvable:$true] %s467_s1 }
  0xe5   :  { %631 = vtanh.f32 %v202_v53 }
  0xe6   :  { %v622_v54 = vpop.eup %621  ;;  %633 = vtanh.f32 %v204_v55 }
  0xe7   :  { %v240_v56 = vpack.c.bf16 %v622_v54, %v620_v52  ;;  %v624_v57 = vpop.eup %623 }
  0xe8   :  { %v626_v58 = vpop.eup %625 }
  0xe9   :  { %310 = vmatpush.bf16.msra.mxu1 %v240_v56  ;;  %v628_v59 = vpop.eup %627  ;;  %v239_v60 = vpack.c.bf16 %v624_v57, %v626_v58 }
  0xea   :  { %v630_v61 = vpop.eup %629 }
  0xeb   :  { %v632_v62 = vpop.eup %631  ;;  %v238_v63 = vpack.c.bf16 %v630_v61, %v628_v59 }
  0xec   :  { %v634_v0 = vpop.eup %633 }
  0xed   :  { %311 = vmatpush.bf16.msra.mxu1 %v239_v60  ;;  %v237_v1 = vpack.c.bf16 %v634_v0, %v632_v62 }
  0xf1   :  { %312 = vmatpush.bf16.msra.mxu1 %v238_v63 }
  0xf5   :  { %313 = vmatpush.bf16.msra.mxu1 %v237_v1 }
  0xf8   :  { %546 = vmatmul.msk.bf16.vlgmr.msra.gmra.mxu1 %vm293_vm1, %v590_v2 }
 0x108   :  { %547 = vmatmul.msk.bf16.gmra.mxu1 %vm293_vm1, %v591_v3 }
 0x118   :  { %548 = vmatmul.msk.bf16.gmra.mxu1 %vm293_vm1, %v592_v4 }
 0x128   :  { %549 = vmatmul.msk.bf16.gmra.mxu1 %vm293_vm1, %v593_v5 }
 0x134   :  { %v358_v49 = vpop.permute.xlu2 %357 }
 0x144   :  { %v440_v55 = vpop.permute.xlu0 %439 }
 0x175   :  { %v315_v6 = vpop.f32.mrf.mxu1 }
 0x176   :  { %v316_v34 = vadd.f32 %v315_v6, %v243_v29 }
 0x17d   :  { %v317_v7 = vpop.f32.mrf.mxu1 }
 0x17e   :  { %v318_v31 = vadd.f32 %v317_v7, %v247_v26 }
 0x185   :  { %v320_v8 = vpop.f32.mrf.mxu1 }
 0x186   :  { %v321_v27 = vadd.f32 %v320_v8, %v251_v16 }
 0x18d   :  { %v322_v9 = vpop.f32.mrf.mxu1 }
 0x18e   :  { %v323_v25 = vadd.f32 %v322_v9, %v255_v22 }
 0x195   :  { %v325_v10 = vpop.f32.mrf.mxu1 }
 0x196   :  { %v326_v24 = vadd.f32 %v325_v10, %v259_v13 }
 0x19d   :  { %v327_v12 = vpop.f32.mrf.mxu1 }
 0x19e   :  { %v328_v20 = vadd.f32 %v327_v12, %v263_v14 }
 0x1a5   :  { %v330_v15 = vpop.f32.mrf.mxu1 }
 0x1a6   :  { %v331_v18 = vadd.f32 %v330_v15, %v267_v11 }
 0x1a8   :  { %635 = vtanh.f32 %v331_v18 }
 0x1ad   :  { %v332_v19 = vpop.f32.mrf.mxu1 }
 0x1ae   :  { %v333_v21 = vadd.f32 %v332_v19, %v271_v17  ;;  %v636_v28 = vpop.eup %635 }
 0x1b0   :  { %637 = vtanh.f32 %v333_v21 }
 0x1b1   :  { %639 = vtanh.f32 %v328_v20 }
 0x1b2   :  { %641 = vtanh.f32 %v326_v24 }
 0x1b3   :  { %643 = vtanh.f32 %v323_v25 }
 0x1b4   :  { %645 = vtanh.f32 %v321_v27 }
 0x1b5   :  { %647 = vtanh.f32 %v318_v31 }
 0x1b6   :  { %v638_v30 = vpop.eup %637  ;;  %649 = vtanh.f32 %v316_v34 }
 0x1b7   :  { %v355_v32 = vpack.c.bf16 %v638_v30, %v636_v28  ;;  %v640_v33 = vpop.eup %639 }
 0x1b8   :  { %v642_v36 = vpop.eup %641 }
 0x1b9   :  { %417 = vmatpush.bf16.msra.mxu2 %v355_v32  ;;  %v354_v37 = vpack.c.bf16 %v640_v33, %v642_v36  ;;  %v644_v38 = vpop.eup %643 }
 0x1ba   :  { %v646_v39 = vpop.eup %645 }
 0x1bb   :  { %v353_v40 = vpack.c.bf16 %v644_v38, %v646_v39  ;;  %v648_v41 = vpop.eup %647 }
 0x1bc   :  { %v650_v42 = vpop.eup %649 }
 0x1bd   :  { %418 = vmatpush.bf16.msra.mxu2 %v354_v37  ;;  %v352_v43 = vpack.c.bf16 %v648_v41, %v650_v42 }
 0x1c1   :  { %419 = vmatpush.bf16.msra.mxu2 %v353_v40 }
 0x1c5   :  { %420 = vmatpush.bf16.msra.mxu2 %v352_v43 }
 0x1c8   :  { %574 = vmatmul.msk.bf16.vlgmr.msra.gmra.mxu2 %vm293_vm1, %v594_v44 }
 0x1d8   :  { %575 = vmatmul.msk.bf16.gmra.mxu2 %vm293_vm1, %v595_v46 }
 0x1e8   :  { %576 = vmatmul.msk.bf16.gmra.mxu2 %vm293_vm1, %v596_v47 }
 0x1f8   :  { %577 = vmatmul.msk.bf16.gmra.mxu2 %vm293_vm1, %v597_v48 }
 0x24b   :  { %v422_v23 = vpop.f32.mrf.mxu2 }
 0x24c   :  { %v423_v50 = vadd.f32 %v422_v23, %v358_v49 }
 0x24e   :  { %651 = vtanh.f32 %v423_v50  ;;  %v457_v6 = vrot.slane %v423_v50, 3 }
 0x253   :  { %v424_v52 = vpop.f32.mrf.mxu2 }
 0x254   :  { %v652_v53 = vpop.eup %651 }
 0x255   :  { %v436_v54 = vsub.f32 %v46_v51, %v652_v53 }
 0x257   :  { %v437_v56 = vmul.f32 %v436_v54, %v436_v54 }
 0x259   :  { %v442_v57 = vmul.f32 %v440_v55, %v437_v56 }
 0x25b   :  { %v444_v58 = vsel %vm443_vm2, %v442_v57, 0.0  ;;  %v426_v59 = vpop.f32.mrf.mxu2 }
 0x25c   :  { %v445_v60 = vrot.slane %v444_v58, 4 }
 0x25e   :  { %v446_v61 = vadd.f32 %v445_v60, %v444_v58 }
 0x260   :  { %v447_v62 = vrot.slane %v446_v61, 2 }
 0x262   :  { %v448_v63 = vadd.f32 %v447_v62, %v446_v61 }
 0x263   :  { %v427_v0 = vpop.f32.mrf.mxu2 }
 0x264   :  { %v449_v1 = vrot.slane %v448_v63, 1 }
 0x266   :  { %v450_v2 = vadd.f32 %v449_v1, %v448_v63 }
 0x268   :  { %v451_v3 = vadd.f32 %v450_v2, %v440_v55 }
 0x26a   :  { %v452_v4 = vmul.f32 -0.5, %v451_v3 }
 0x26b   :  { %v429_v5 = vpop.f32.mrf.mxu2 }
 0x26c   :  { %v454_v7 = vrot.slane %v452_v4, 4 }
 0x26e   :  { %v460_v8 = vsel %vm459_vm3, %v454_v7, %v457_v6 }
 0x26f   :  { %461 = vst [vmem:[#allocation2] sm:$0x3] %v460_v8 }
 0x270   :  { %472 = dma.vmem_to_hbm [thread:$0]  %s468_s1, 32, %s470_s0, [#allocation3]  }
 0x273   :  { %v430_v9 = vpop.f32.mrf.mxu2 }
 0x27b   :  { %v432_v10 = vpop.f32.mrf.mxu2 }
 0x283   :  { %v433_v11 = vpop.f32.mrf.mxu2 }
 0x284   :  { %677 = dma.done.wait [#allocation3], 32  }
 0x285   :  { %678 = vsyncadd [#allocation3], 4294967264 }
 0x286   :  { %477 = vsyncpa [#allocation3], 1 }

</bundles_post_ra>
